<compile_context>
chip_gen: v6e
topology: v6e:2x2x1
jax: 0.10.0
libtpu: 0.0.40
codegen_flags: <defaults>
</compile_context>

<pallas_src>
import jax
import jax.numpy as jnp
from jax.experimental import pallas as pl
from jax.experimental.pallas import tpu as pltpu


def _round_up(v: int, m: int) -> int:
    return ((v + m - 1) // m) * m


def _pick_row_block(C: int, row_cap: int = 256) -> int:
    """Largest divisor of C that is a multiple of 8 and <= row_cap, else C."""
    if C <= row_cap:
        return C
    tc = (row_cap // 8) * 8
    while tc >= 8:
        if C % tc == 0:
            return tc
        tc -= 8
    return C


# --------------------- pass 1: energy accumulation + softmax ---------------------

def _softmax_finalize(att_ref, gamma):
    """In-place: att <- gamma * softmax(rowmax(E) - E, axis=0) on the (B, tc, C) block."""
    energy = att_ref[...]                                       # f32
    energy_new = jnp.max(energy, axis=-1, keepdims=True) - energy
    # F.softmax with implicit dim -> dim=0 for a 3-D tensor (PyTorch legacy rule).
    m = jnp.max(energy_new, axis=0, keepdims=True)
    ex = jnp.exp(energy_new - m)
    denom = jnp.sum(ex, axis=0, keepdims=True)
    # Exact divide (approx reciprocal caused >1e-3 attention error; review flagged it).
    att_ref[...] = (gamma * ex) / denom


def _energy_kernel(gamma_ref, x_ref, att_ref):
    """Single row block: grid = (num_N_tiles,), accumulate straight into att_ref."""
    k = pl.program_id(0)

    @pl.when(k == 0)
    def _():
        att_ref[...] = jnp.zeros_like(att_ref)

    x = x_ref[...]                                              # (B, C, TN), native dtype
    # NOTE: if the Mosaic bundle shows a per-tile vxpose here, feed a pre-transposed
    # (B, N, C) copy of x instead so the MXU sees the canonical (c,n)x(n,d) form.
    att_ref[...] += jnp.einsum("bcn,bdn->bcd", x, x,
                               preferred_element_type=jnp.float32)

    @pl.when(k == pl.num_programs(0) - 1)
    def _():
        _softmax_finalize(att_ref, gamma_ref[0])


def _energy_kernel_rowblocked(gamma_ref, xr_ref, xf_ref, att_ref):
    """Row-blocked: grid = (C//tc, num_N_tiles), ("parallel", "arbitrary")."""
    k = pl.program_id(1)

    @pl.when(k == 0)
    def _():
        att_ref[...] = jnp.zeros_like(att_ref)

    att_ref[...] += jnp.einsum("bcn,bdn->bcd", xr_ref[...], xf_ref[...],
                               preferred_element_type=jnp.float32)

    @pl.when(k == pl.num_programs(1) - 1)
    def _():
        _softmax_finalize(att_ref, gamma_ref[0])


# --------------------- pass 2: out = (gamma*A) @ x + x (per batch, per N tile) ---------------------

def _apply_kernel(att_ref, x_ref, out_ref):
    x = x_ref[...]                                              # (C, TN), native dtype
    out = jnp.dot(att_ref[...], x, preferred_element_type=jnp.float32)
    out_ref[...] = (out + x.astype(jnp.float32)).astype(out_ref.dtype)


# ------------------------------------ wrapper ------------------------------------

def cam_module_forward(x, gamma, *, n_tile_cap=512, row_block_cap=256,
                       vmem_limit_bytes=48 * 1024 * 1024):
    """x: (B, C, H, W), gamma: (1,). Returns (B, C, H, W)."""
    B, C, H, W = x.shape
    N = H * W
    x_flat = x.reshape(B, C, N)

    # Lane-dense tiles over N (multiples of 128), zero-padded; zero columns add
    # nothing to the energy and padded output columns are sliced off afterwards.
    tn = min(n_tile_cap, _round_up(N, 128))
    n_pad = _round_up(N, tn)
    if n_pad != N:
        x_flat = jnp.pad(x_flat, ((0, 0), (0, 0), (0, n_pad - N)))
    num_tiles = n_pad // tn

    gamma = gamma.astype(jnp.float32)

    tc = _pick_row_block(C, row_block_cap)
    num_row_blocks = C // tc

    # ---- pass 1: attention = gamma * softmax(rowmax(E) - E, axis=0), E[b] = x[b] @ x[b]^T ----
    if num_row_blocks == 1:
        attention = pl.pallas_call(
            _energy_kernel,
            out_shape=jax.ShapeDtypeStruct((B, C, C), jnp.float32),
            grid_spec=pltpu.PrefetchScalarGridSpec(
                num_scalar_prefetch=0,
                grid=(num_tiles,),
                in_specs=[
                    pl.BlockSpec(memory_space=pltpu.MemorySpace.SMEM),       # gamma (1,)
                    pl.BlockSpec((B, C, tn), lambda k: (0, 0, k)),           # x tile
                ],
                out_specs=pl.BlockSpec((B, C, C), lambda k: (0, 0, 0)),      # resident acc
            ),
            compiler_params=pltpu.CompilerParams(
                dimension_semantics=("arbitrary",),       # sequential reduction over N tiles
                vmem_limit_bytes=vmem_limit_bytes,
            ),
        )(gamma, x_flat)
    else:
        attention = pl.pallas_call(
            _energy_kernel_rowblocked,
            out_shape=jax.ShapeDtypeStruct((B, C, C), jnp.float32),
            grid_spec=pltpu.PrefetchScalarGridSpec(
                num_scalar_prefetch=0,
                grid=(num_row_blocks, num_tiles),
                in_specs=[
                    pl.BlockSpec(memory_space=pltpu.MemorySpace.SMEM),       # gamma (1,)
                    pl.BlockSpec((B, tc, tn), lambda i, k: (0, i, k)),       # row block of x
                    pl.BlockSpec((B, C, tn), lambda i, k: (0, 0, k)),        # full-C x tile
                ],
                out_specs=pl.BlockSpec((B, tc, C), lambda i, k: (0, i, 0)),  # resident acc
            ),
            compiler_params=pltpu.CompilerParams(
                dimension_semantics=("parallel", "arbitrary"),  # row blocks across TCs
                vmem_limit_bytes=vmem_limit_bytes,
            ),
        )(gamma, x_flat, x_flat)

    # ---- pass 2: per-(batch, tile) attention @ x + residual (fully parallel) ----
    out_flat = pl.pallas_call(
        _apply_kernel,
        out_shape=jax.ShapeDtypeStruct((B, C, n_pad), x.dtype),
        grid_spec=pltpu.PrefetchScalarGridSpec(
            num_scalar_prefetch=0,
            grid=(B, num_tiles),
            in_specs=[
                pl.BlockSpec((None, C, C), lambda b, k: (b, 0, 0)),   # attention[b] (resident over k)
                pl.BlockSpec((None, C, tn), lambda b, k: (b, 0, k)),  # x tile
            ],
            out_specs=pl.BlockSpec((None, C, tn), lambda b, k: (b, 0, k)),
        ),
        compiler_params=pltpu.CompilerParams(
            dimension_semantics=("parallel", "parallel"),     # megacore over B and N tiles
            vmem_limit_bytes=vmem_limit_bytes,
        ),
    )(attention, x_flat)

    if n_pad != N:
        out_flat = out_flat[:, :, :N]
    return out_flat.reshape(B, C, H, W)


# ------------------------------ pure-JAX reference ------------------------------

def cam_module_reference(x, gamma):
    """Mirrors the PyTorch forward (including the implicit softmax dim=0)."""
    B, C, H, W = x.shape
    xf = x.reshape(B, C, H * W)
    energy = jnp.einsum("bcn,bdn->bcd", xf, xf, preferred_element_type=jnp.float32)
    energy_new = jnp.max(energy, axis=-1, keepdims=True) - energy
    attention = jax.nn.softmax(energy_new, axis=0)
    out = jnp.einsum("bcd,bdn->bcn", attention, xf, preferred_element_type=jnp.float32)
    return (gamma[0] * out + xf).reshape(B, C, H, W)


if __name__ == "__main__":
    key = jax.random.PRNGKey(0)
    B, C, H, W = 2, 4, 16, 16
    # Moderate-magnitude inputs: the channel Gram matrix feeds an exp(), so keep
    # energies O(1) so that MXU-vs-XLA matmul precision differences stay far
    # inside the comparison tolerance.
    x = 0.1 * jax.random.normal(key, (B, C, H, W), dtype=jnp.float32)

    # Module __init__: gamma = zeros(1)  -> out must equal x exactly.
    gamma0 = jnp.zeros((1,), dtype=jnp.float32)
    out0 = cam_module_forward(x, gamma0)
    jax.block_until_ready(out0)
    assert out0.shape == (B, C, H, W)
    ref0 = cam_module_reference(x, gamma0)
    assert jnp.max(jnp.abs(out0 - ref0)) < 1e-5

    # Exercise the attention path numerically with a nonzero gamma.
    gamma_nz = jnp.full((1,), 0.5, dtype=jnp.float32)
    out_nz = cam_module_forward(x, gamma_nz)
    jax.block_until_ready(out_nz)
    ref_nz = cam_module_reference(x, gamma_nz)
    # Tolerance budgets for possible bf16-pass vs f32 matmul differences between
    # the in-kernel MXU dot and the XLA reference dot (exp-sensitive path).
    assert jnp.max(jnp.abs(out_nz - ref_nz)) < 1e-2

    print("KERNEL_OK")
</pallas_src>

<mosaic_0001>
module attributes {stable_mosaic.version = 11 : i64} {
  func.func @_energy_kernel(%arg0: i32, %arg1: memref<1xf32, #tpu.memory_space<smem>>, %arg2: memref<2x4x256xf32, #tpu.memory_space<vmem>>, %arg3: memref<2x4x4xf32, #tpu.memory_space<vmem>>) attributes {dimension_semantics = [#tpu.dimension_semantics<arbitrary>], iteration_bounds = array<i64: 1>, scalar_prefetch = 0 : i64, scratch_operands = 0 : i64, tpu.core_type = #tpu.core_type<tc>, window_params = [{transform_indices = @transform_0, window_bounds = array<i64: 1>}, {transform_indices = @transform_1, window_bounds = array<i64: 2, 4, 256>}, {pipeline_mode = #tpu.pipeline_mode<synchronous>, transform_indices = @transform_2, window_bounds = array<i64: 2, 4, 4>}]} {
    %c0_i32 = arith.constant 0 : i32
    %0 = arith.cmpi eq, %arg0, %c0_i32 : i32
    %1 = arith.extui %0 : i1 to i32
    %c0_i32_0 = arith.constant 0 : i32
    %2 = arith.cmpi ne, %1, %c0_i32_0 : i32
    scf.if %2 {
      %cst_11 = arith.constant 0.000000e+00 : f32
      %11 = vector.broadcast %cst_11 : f32 to vector<2x4x4xf32>
      %c0_12 = arith.constant 0 : index
      %c0_13 = arith.constant 0 : index
      %c0_14 = arith.constant 0 : index
      %12 = vector.load %arg3[%c0_12, %c0_13, %c0_14] : memref<2x4x4xf32, #tpu.memory_space<vmem>>, vector<2x4x4xf32>
      tpu.vector_store %arg3[%c0_12, %c0_13, %c0_14], %11 {strides = array<i32>} : memref<2x4x4xf32, #tpu.memory_space<vmem>>, vector<2x4x4xf32>,
    } else {
    }
    %c0 = arith.constant 0 : index
    %c0_1 = arith.constant 0 : index
    %c0_2 = arith.constant 0 : index
    %3 = vector.load %arg2[%c0, %c0_1, %c0_2] : memref<2x4x256xf32, #tpu.memory_space<vmem>>, vector<2x4x256xf32>
    %c0_3 = arith.constant 0 : index
    %c0_4 = arith.constant 0 : index
    %c0_5 = arith.constant 0 : index
    %4 = vector.load %arg3[%c0_3, %c0_4, %c0_5] : memref<2x4x4xf32, #tpu.memory_space<vmem>>, vector<2x4x4xf32>
    "tpu.trace_start"() <{level = 10 : i32, message = "bcn,bdn->bcd"}> : () -> ()
    %cst = arith.constant dense<0.000000e+00> : vector<2x4x4xf32>
    %5 = tpu.matmul %3, %3, %cst {dimension_numbers = #tpu.dot_dimension_numbers<[2], [2], [1], [1], [0, 0, 0, 1, 1, 1], [0], [0]>} : vector<2x4x256xf32>, vector<2x4x256xf32>, vector<2x4x4xf32> -> vector<2x4x4xf32>
    "tpu.trace_stop"() : () -> ()
    %6 = arith.addf %4, %5 : vector<2x4x4xf32>
    %c0_6 = arith.constant 0 : index
    %c0_7 = arith.constant 0 : index
    %c0_8 = arith.constant 0 : index
    %7 = vector.load %arg3[%c0_6, %c0_7, %c0_8] : memref<2x4x4xf32, #tpu.memory_space<vmem>>, vector<2x4x4xf32>
    tpu.vector_store %arg3[%c0_6, %c0_7, %c0_8], %6 {strides = array<i32>} : memref<2x4x4xf32, #tpu.memory_space<vmem>>, vector<2x4x4xf32>,
    %c0_i32_9 = arith.constant 0 : i32
    %8 = arith.cmpi eq, %arg0, %c0_i32_9 : i32
    %9 = arith.extui %8 : i1 to i32
    %c0_i32_10 = arith.constant 0 : i32
    %10 = arith.cmpi ne, %9, %c0_i32_10 : i32
    scf.if %10 {
      %c0_11 = arith.constant 0 : index
      %11 = memref.load %arg1[%c0_11] : memref<1xf32, #tpu.memory_space<smem>>
      %c0_12 = arith.constant 0 : index
      %c0_13 = arith.constant 0 : index
      %c0_14 = arith.constant 0 : index
      %12 = vector.load %arg3[%c0_12, %c0_13, %c0_14] : memref<2x4x4xf32, #tpu.memory_space<vmem>>, vector<2x4x4xf32>
      %cst_15 = arith.constant dense<0xFF800000> : vector<2x4xf32>
      %13 = vector.multi_reduction <maximumf>, %12, %cst_15 [2] : vector<2x4x4xf32> to vector<2x4xf32>
      %14 = vector.shape_cast %13 : vector<2x4xf32> to vector<2x4x1xf32>
      %15 = vector.broadcast %14 : vector<2x4x1xf32> to vector<2x4x4xf32>
      %16 = arith.subf %15, %12 : vector<2x4x4xf32>
      %cst_16 = arith.constant dense<0xFF800000> : vector<4x4xf32>
      %17 = vector.multi_reduction <maximumf>, %16, %cst_16 [0] : vector<2x4x4xf32> to vector<4x4xf32>
      %18 = vector.shape_cast %17 : vector<4x4xf32> to vector<1x4x4xf32>
      %19 = vector.broadcast %18 : vector<1x4x4xf32> to vector<2x4x4xf32>
      %20 = arith.subf %16, %19 : vector<2x4x4xf32>
      %21 = math.exp %20 : vector<2x4x4xf32>
      %cst_17 = arith.constant dense<0.000000e+00> : vector<4x4xf32>
      %22 = vector.multi_reduction <add>, %21, %cst_17 [0] : vector<2x4x4xf32> to vector<4x4xf32>
      %23 = vector.shape_cast %22 : vector<4x4xf32> to vector<1x4x4xf32>
      %24 = vector.broadcast %11 : f32 to vector<2x4x4xf32>
      %25 = arith.mulf %24, %21 : vector<2x4x4xf32>
      %26 = vector.broadcast %23 : vector<1x4x4xf32> to vector<2x4x4xf32>
      %27 = arith.divf %25, %26 : vector<2x4x4xf32>
      %c0_18 = arith.constant 0 : index
      %c0_19 = arith.constant 0 : index
      %c0_20 = arith.constant 0 : index
      %28 = vector.load %arg3[%c0_18, %c0_19, %c0_20] : memref<2x4x4xf32, #tpu.memory_space<vmem>>, vector<2x4x4xf32>
      tpu.vector_store %arg3[%c0_18, %c0_19, %c0_20], %27 {strides = array<i32>} : memref<2x4x4xf32, #tpu.memory_space<vmem>>, vector<2x4x4xf32>,
    } else {
    }
    return
  }
  func.func @transform_0(%arg0: i32) -> i32 {
    %c0_i32 = arith.constant 0 : i32
    %c0_i32_0 = arith.constant 0 : i32
    return %c0_i32 : i32
  }
  func.func @transform_1(%arg0: i32) -> (i32, i32, i32) {
    %c0_i32 = arith.constant 0 : i32
    %c0_i32_0 = arith.constant 0 : i32
    %c0_i32_1 = arith.constant 0 : i32
    return %c0_i32, %c0_i32_0, %arg0 : i32, i32, i32
  }
  func.func @transform_2(%arg0: i32) -> (i32, i32, i32) {
    %c0_i32 = arith.constant 0 : i32
    %c0_i32_0 = arith.constant 0 : i32
    %c0_i32_1 = arith.constant 0 : i32
    %c0_i32_2 = arith.constant 0 : i32
    return %c0_i32, %c0_i32_0, %c0_i32_1 : i32, i32, i32
  }
}

</mosaic_0001>

<bundles_post_ra>
// kernel: tpu_custom_call.1
= control target key start
LH: loop header
LB: loop body
LE: loop exit
PB: predicated region body
PF: predicated region fallthrough
CT: control target
= control target key end

     0   :  { %8 = vsyncpa [#allocation4], 0  ;;  %s342_s0 = inlined_call_operand.<no memory space> [shape: f32[1], index: 0, kind: input, shape index: {}]   ;;  %s343_s1 = inlined_call_operand.hbm [shape: f32[2,4,256], index: 1, kind: input, shape index: {}]   ;;  %s344_s2 = inlined_call_operand.hbm [shape: f32[2,4,4], index: 2, kind: output, shape index: {}]  }
   0x1   :  { %9 = vsyncpa [#allocation5], 0  ;;  %s299_s9 = smov [#allocation3]  }
   0x2   :  { %s17_s10 = sshll.u32 %s299_s9, 4  ;;  %s18_s10 = int_to_ptr.vmem [resolvable:$true] %s17_s10 }
   0x3   :  { %s263_s11 = scalar_lea.vmem %s18_s10, 256  ;;  %p268_p1 = scmp.lt.s32.totalorder %s18_s10, %s18_s10 }
   0x4   :  { %p264_p0 = scmp.ne.s32.totalorder %s18_s10, %s263_s11  ;;  %p269_p2 = scmp.lt.s32.totalorder %s263_s11, %s263_s11 }
   0x6   :  { %p270_p3 = por %p269_p2, %p268_p1 }
   0x8   :  { %p271_p4 = pnand %p270_p3, %p264_p0 }
   0xa   :  { %274 = shalt.err (!%p271_p4)
}
   0xb   :  { %s300_s12 = smov 128   ;;  %s301_s13 = smov 8  }
   0xc   :  { %23 = dma.hbm_to_vmem [thread:$0]  %s343_s1, 256, %s18_s10, [#allocation4], %s300_s12, %s300_s12, %s301_s13  }
   0xd   :  { %295 = dma.done.wait [#allocation4], 256  }
   0xe   :  { %296 = vsyncadd [#allocation4], 4294967040  ;;  %vm31_vm0 = vcmask 27648   ;;  %v302_v0 = vmov 0.0   ;;  %v34_v1 = vld [vmem:[#allocation3] sm:$0xff]  ;;  %v35_v2 = vld [vmem:[#allocation3 + $0x8] sm:$0xff]  ;;  %v215_v33 = vstv %s342_s0 }
   0xf   :  { %32 = vst.msk [vmem:[#allocation6] sm:$0xf] %vm31_vm0, %v302_v0  ;;  %33 = vst.msk [vmem:[#allocation6 + $0x4] sm:$0xf] %vm31_vm0, %v302_v0  ;;  %v39_v3 = vcombine.high %v34_v1, %v34_v1  ;;  %v112_v4 = vcombine.high %v35_v2, %v35_v2  ;;  %s303_s17 = smov [#allocation6]  }
  0x10   :  { %s228_s18 = sshll.u32 %s303_s17, 4  ;;  %s229_s18 = int_to_ptr.vmem [resolvable:$true] %s228_s18 }
  0x11   :  { %71 = vmatprep.subr.mxu0 %v39_v3  ;;  %144 = vmatprep.subr.mxu1 %v112_v4  ;;  %s275_s19 = scalar_lea.vmem %s229_s18, 128  ;;  %p280_p6 = scmp.lt.s32.totalorder %s229_s18, %s229_s18 }
  0x12   :  { %72 = vmatpush1.xpose.msra.mxu0 %v34_v1  ;;  %105 = vmatprep.mubr.f32.mxu0 %v39_v3  ;;  %p276_p5 = scmp.ne.s32.totalorder %s229_s18, %s275_s19  ;;  %p281_p7 = scmp.lt.s32.totalorder %s275_s19, %s275_s19 }
  0x13   :  { %145 = vmatpush1.xpose.msra.mxu1 %v35_v2  ;;  %178 = vmatprep.mubr.f32.mxu1 %v112_v4 }
  0x14   :  { %p282_p8 = por %p281_p7, %p280_p6 }
  0x15   :  { %106 = vmatmul.mubr.f32.vlgmr.msra.gmra.mxu0 %v34_v1 }
  0x16   :  { %179 = vmatmul.mubr.f32.vlgmr.msra.gmra.mxu1 %v35_v2  ;;  %v36_v5 = vld [vmem:[#allocation6] sm:$0xf]  ;;  %v37_v6 = vld [vmem:[#allocation6 + $0x4] sm:$0xf]  ;;  %p283_p9 = pnand %p282_p8, %p276_p5 }
  0xd5   :  { %v107_v7 = vpop.f32.mrf.mxu0 }
  0xd6   :  { %v184_v8 = vadd.f32 %v107_v7, %v36_v5  ;;  %v180_v9 = vpop.f32.mrf.mxu1 }
  0xd7   :  { %v109_v10 = vpop.f32.mrf.mxu0  ;;  %v185_v11 = vadd.f32 %v180_v9, %v37_v6 }
  0xd8   :  { %187 = vst.msk [vmem:[#allocation6] sm:$0xf] %vm31_vm0, %v184_v8  ;;  %v182_v12 = vpop.f32.mrf.mxu1 }
  0xd9   :  { %188 = vst.msk [vmem:[#allocation6 + $0x4] sm:$0xf] %vm31_vm0, %v185_v11 }
  0xdf   :  { %v193_v13 = vld [vmem:[#allocation6] sm:$0xf] }
  0xe0   :  { %v195_v14 = vsel %vm31_vm0, %v193_v13, -inf  ;;  %v194_v15 = vld [vmem:[#allocation6 + $0x4] sm:$0xf] }
  0xe1   :  { %196 = vmax.xlane.f32.xlu0 %v195_v14  ;;  %v198_v16 = vsel %vm31_vm0, %v194_v15, -inf }
  0xe5   :  { %199 = vmax.xlane.f32.xlu0 %v198_v16 }
 0x16a   :  { %v197_v17 = vpop.xlane.xlu0 %196 }
 0x16b   :  { %v201_v18 = vsub.f32 %v197_v17, %v193_v13 }
 0x16d   :  { %v203_v21 = vsel %vm31_vm0, %v201_v18, -inf }
 0x16e   :  { %v200_v19 = vpop.xlane.xlu0 %199 }
 0x16f   :  { %v202_v20 = vsub.f32 %v200_v19, %v194_v15 }
 0x171   :  { %v204_v22 = vsel %vm31_vm0, %v202_v20, -inf }
 0x172   :  { %v205_v23 = vmax.f32 %v203_v21, %v204_v22 }
 0x174   :  { %v206_v24 = vsub.f32 %v201_v18, %v205_v23  ;;  %v207_v25 = vsub.f32 %v202_v20, %v205_v23 }
 0x176   :  { %v208_v26 = vmul.f32 1.442695, %v206_v24  ;;  %v210_v27 = vmul.f32 1.442695, %v207_v25 }
 0x178   :  { %249 = vpow2.f32 %v208_v26 }
 0x179   :  { %251 = vpow2.f32 %v210_v27 }
 0x185   :  { %v250_v28 = vpop.eup %249 }
 0x186   :  { %v252_v29 = vpop.eup %251  ;;  %v212_v30 = vsel %vm31_vm0, %v250_v28, 0.0  ;;  %v216_v34 = vmul.f32 %v250_v28, %v215_v33 }
 0x187   :  { %v213_v31 = vsel %vm31_vm0, %v252_v29, 0.0  ;;  %v217_v35 = vmul.f32 %v252_v29, %v215_v33 }
 0x188   :  { %v214_v32 = vadd.f32 %v213_v31, %v212_v30 }
 0x18a   :  { %253 = vrcp.f32 %v214_v32 }
 0x197   :  { %v254_v36 = vpop.eup %253 }
 0x198   :  { %v219_v37 = vmul.f32 %v254_v36, %v216_v34  ;;  %v220_v38 = vmul.f32 %v254_v36, %v217_v35 }
 0x19a   :  { %221 = vst.msk [vmem:[#allocation6] sm:$0xf] %vm31_vm0, %v219_v37  ;;  %222 = vst.msk [vmem:[#allocation6 + $0x4] sm:$0xf] %vm31_vm0, %v220_v38 }
 0x19b   :  { %286 = shalt.err (!%p283_p9)
}
 0x19c   :  { %s304_s0 = smov 64   ;;  %s305_s20 = smov 4  }
 0x19d   :  { %234 = dma.vmem_to_hbm [thread:$0]  %s229_s18, 128, %s344_s2, [#allocation5], %s304_s0, %s304_s0, %s305_s20  }
 0x19e   :  { %297 = dma.done.wait [#allocation5], 128  }
 0x19f   :  { %298 = vsyncadd [#allocation5], 4294967168 }
 0x1a0   :  { %238 = vsyncpa [#allocation4], 1 }
 0x1a1   :  { %239 = vsyncpa [#allocation5], 1 }

</bundles_post_ra>
